<compile_context>
chip_gen: v5e
topology: v5e:2x2
jax: 0.10.0
libtpu: 0.0.40
codegen_flags: <defaults>
</compile_context>

<pallas_src>
import functools

import jax
import jax.numpy as jnp
from jax.experimental import pallas as pl
from jax.experimental.pallas import tpu as pltpu

LANE = 128


def _round_up(x, m):
    return (x + m - 1) // m * m


# ----------------------------- Pallas kernel -----------------------------

def tcn_stack_kernel(*refs, level_cfgs, ksize, tl):
    """Fused TemporalConvNet forward for one (batch, time-tile) grid cell.

    refs = [ x_tile,
             (w1_stacked, b1, w2_stacked, b2[, wd, bd]) per level,  # lane-padded
             out_tile,
             (hist1, hist2) per level with pad > 0 ]                # VMEM scratch
    """
    n_w = sum(6 if has_ds else 4 for _, has_ds in level_cfgs)
    x_ref = refs[0]
    w_refs = refs[1:1 + n_w]
    o_ref = refs[1 + n_w]
    hist_refs = refs[2 + n_w:]

    lt = pl.program_id(1)

    # First time-tile of every batch element: the causal context is all zeros
    # (== the left zero padding of Conv1d(padding=(K-1)*d) followed by Chomp1d).
    if hist_refs:
        @pl.when(lt == 0)
        def _():
            for h in hist_refs:
                h[...] = jnp.zeros_like(h)

    def causal_conv(inp, hist_ref, w_ref, b_ref, dilation):
        """out[t] = sum_k inp[t - d*(K-1-k)] @ W[k] + b  via ONE fused MXU dot."""
        pad = dilation * (ksize - 1)
        if pad == 0:
            stacked = inp                                  # 1x1 conv, no history
        else:
            hb = hist_ref.shape[0]                         # round_up(pad, 8) rows
            # Prepend the last `hb` input rows of the previous tile (8-aligned
            # concat), then read the K taps as static slices and stack them on
            # the lane axis so the whole conv is a single contraction of K*Cp.
            xp = jnp.concatenate([hist_ref[...], inp], axis=0)      # (hb+tl, Cp)
            hist_ref[...] = xp[tl:tl + hb, :]              # carry halo to next tile
            off = hb - pad
            stacked = jnp.concatenate(
                [xp[off + dilation * k: off + dilation * k + tl, :]
                 for k in range(ksize)],
                axis=1)                                    # (tl, K*Cp)
        acc = jnp.dot(stacked, w_ref[...], preferred_element_type=jnp.float32)
        return acc + b_ref[...]

    cur = x_ref[0]                                         # (tl, Cp) float32
    wi = 0
    hi = 0
    for dilation, has_ds in level_cfgs:
        pad = dilation * (ksize - 1)
        w1, b1, w2, b2 = w_refs[wi], w_refs[wi + 1], w_refs[wi + 2], w_refs[wi + 3]
        if has_ds:
            wd, bd = w_refs[wi + 4], w_refs[wi + 5]
            wi += 6
        else:
            wd, bd = None, None
            wi += 4
        if pad > 0:
            h1_ref, h2_ref = hist_refs[hi], hist_refs[hi + 1]
            hi += 2
        else:
            h1_ref = h2_ref = None

        # conv1 (weight-normed, causal) + chomp + relu
        # TODO(synk): nn.Dropout is identity in inference mode; no RNG masking.
        h = jnp.maximum(causal_conv(cur, h1_ref, w1, b1, dilation), 0.0)
        # conv2 (weight-normed, causal) + chomp + relu
        out = jnp.maximum(causal_conv(h, h2_ref, w2, b2, dilation), 0.0)
        # residual (1x1 downsample conv only when the channel count changes)
        if has_ds:
            res = jnp.dot(cur, wd[...], preferred_element_type=jnp.float32) + bd[...]
        else:
            res = cur
        cur = jnp.maximum(out + res, 0.0)

    o_ref[0] = cur


# ----------------------------- wrapper / glue -----------------------------

def _prep_level(w1, b1, w2, b2, wd, bd, cp, ksize):
    """Lane-pad a level's weights to Cp and stack the K taps along rows."""
    k, cin, cout = w1.shape
    w1p = jnp.zeros((k, cp, cp), jnp.float32).at[:, :cin, :cout].set(w1)
    w2p = jnp.zeros((k, cp, cp), jnp.float32).at[:, :cout, :cout].set(w2)
    args = [
        w1p.reshape(k * cp, cp),
        jnp.zeros((1, cp), jnp.float32).at[:, :cout].set(b1),
        w2p.reshape(k * cp, cp),
        jnp.zeros((1, cp), jnp.float32).at[:, :cout].set(b2),
    ]
    if wd is not None:
        args += [
            jnp.zeros((cp, cp), jnp.float32).at[:cin, :cout].set(wd),
            jnp.zeros((1, cp), jnp.float32).at[:, :cout].set(bd),
        ]
    return args


def tcn_forward(x_ncl, params, dilations, ksize, *, tl=128):
    """TemporalConvNet forward. x_ncl: (N, C, L) like PyTorch; returns (N, C_last, L)."""
    n, c_in, seq_len = x_ncl.shape
    c_last = params[-1][2].shape[-1]
    c_max = max([c_in] + [p[0].shape[2] for p in params])
    cp = _round_up(c_max, LANE)                       # lane-dense channel width

    tl = max(8, min(_round_up(tl, 8), _round_up(seq_len, 8)))
    lt_count = pl.cdiv(seq_len, tl)
    lpad = lt_count * tl

    # TODO(synk): optionally cast activations/weights to bf16 on v6e/v7x (keep
    # f32 accumulation); kept f32 here for exact parity with the f32 module.
    x = jnp.transpose(x_ncl, (0, 2, 1)).astype(jnp.float32)         # NCL -> NLC
    x = jnp.pad(x, ((0, 0), (0, lpad - seq_len), (0, cp - c_in)))   # lane/time pad

    level_cfgs = []
    weight_args = []
    weight_specs = []
    scratch = []
    for (w1, b1, w2, b2, wd, bd), d in zip(params, dilations):
        has_ds = wd is not None
        level_cfgs.append((d, has_ds))
        args = _prep_level(w1, b1, w2, b2, wd, bd, cp, ksize)
        weight_args += args
        # Weights stay resident in VMEM (constant block index across the grid).
        weight_specs += [pl.BlockSpec(a.shape, lambda b, l: (0, 0)) for a in args]
        pad = d * (ksize - 1)
        if pad > 0:
            hb = _round_up(pad, 8)
            scratch += [pltpu.VMEM((hb, cp), jnp.float32),
                        pltpu.VMEM((hb, cp), jnp.float32)]

    kernel = functools.partial(
        tcn_stack_kernel, level_cfgs=tuple(level_cfgs), ksize=ksize, tl=tl)

    out = pl.pallas_call(
        kernel,
        out_shape=jax.ShapeDtypeStruct((n, lpad, cp), jnp.float32),
        grid=(n, lt_count),
        in_specs=[pl.BlockSpec((1, tl, cp), lambda b, l: (b, l, 0))] + weight_specs,
        out_specs=pl.BlockSpec((1, tl, cp), lambda b, l: (b, l, 0)),
        scratch_shapes=scratch,
        compiler_params=pltpu.CompilerParams(
            dimension_semantics=("parallel", "arbitrary"),
            vmem_limit_bytes=32 * 1024 * 1024),
    )(x, *weight_args)

    # NLC -> NCL, drop the lane / time padding.
    return jnp.transpose(out[:, :seq_len, :c_last], (0, 2, 1))


# ----------------------- parameter init (plain JAX) -----------------------

def _weight_norm(v, g):
    """PyTorch weight_norm (dim=0): w = g * v / ||v||, norm over non-output dims."""
    norm = jnp.sqrt(jnp.sum(v * v, axis=tuple(range(1, v.ndim)), keepdims=True))
    g_shape = (v.shape[0],) + (1,) * (v.ndim - 1)
    return g.reshape(g_shape) * v / norm


def init_tcn_params(key, num_inputs, num_channels, ksize):
    """Deterministic parameters for all TemporalBlocks, in (K, Cin, Cout) layout."""
    params, dilations = [], []
    for i, cout in enumerate(num_channels):
        cin = num_inputs if i == 0 else num_channels[i - 1]
        dilations.append(2 ** i)
        key, k1, k2, k3, k4, k5, k6, k7, k8 = jax.random.split(key, 9)

        v1 = 0.01 * jax.random.normal(k1, (cout, cin, ksize), jnp.float32)
        g1 = 1.0 + 0.1 * jax.random.normal(k2, (cout,), jnp.float32)
        w1 = jnp.transpose(_weight_norm(v1, g1), (2, 1, 0))        # (K, Cin, Cout)
        b1 = (0.05 * jax.random.normal(k3, (cout,), jnp.float32)).reshape(1, cout)

        v2 = 0.01 * jax.random.normal(k4, (cout, cout, ksize), jnp.float32)
        g2 = 1.0 + 0.1 * jax.random.normal(k5, (cout,), jnp.float32)
        w2 = jnp.transpose(_weight_norm(v2, g2), (2, 1, 0))        # (K, Cout, Cout)
        b2 = (0.05 * jax.random.normal(k6, (cout,), jnp.float32)).reshape(1, cout)

        if cin != cout:
            wd_oik = 0.01 * jax.random.normal(k7, (cout, cin, 1), jnp.float32)
            wd = jnp.transpose(wd_oik[:, :, 0], (1, 0))            # (Cin, Cout)
            bd = (0.05 * jax.random.normal(k8, (cout,), jnp.float32)).reshape(1, cout)
        else:
            wd, bd = None, None
        params.append((w1, b1, w2, b2, wd, bd))
    return params, dilations


# ------------------------- pure-JAX reference -------------------------

def tcn_reference(x_ncl, params, dilations, ksize):
    hp = jax.lax.Precision.HIGHEST
    x = jnp.transpose(x_ncl, (0, 2, 1)).astype(jnp.float32)
    for (w1, b1, w2, b2, wd, bd), d in zip(params, dilations):
        pad = d * (ksize - 1)

        def causal(inp, w, b):
            xp = jnp.pad(inp, ((0, 0), (pad, 0), (0, 0)))
            acc = jnp.zeros(inp.shape[:2] + (w.shape[-1],), jnp.float32)
            for k in range(ksize):
                acc = acc + jnp.einsum('nlc,co->nlo',
                                       xp[:, d * k:d * k + inp.shape[1], :], w[k],
                                       precision=hp)
            return acc + b

        h = jnp.maximum(causal(x, w1, b1), 0.0)
        out = jnp.maximum(causal(h, w2, b2), 0.0)
        res = x if wd is None else jnp.einsum('nlc,co->nlo', x, wd, precision=hp) + bd
        x = jnp.maximum(out + res, 0.0)
    return jnp.transpose(x, (0, 2, 1))


if __name__ == "__main__":
    key = jax.random.PRNGKey(0)
    num_inputs = 4
    num_channels = [8, 8]
    kernel_size = 2
    batch, seq_len = 2, 16

    key, kx = jax.random.split(key)
    x = jax.random.normal(kx, (batch, num_inputs, seq_len), jnp.float32)   # NCL

    params, dilations = init_tcn_params(key, num_inputs, num_channels, kernel_size)

    # tl=8 exercises the multi-tile (history-carry) path on this small demo.
    y = tcn_forward(x, params, dilations, kernel_size, tl=8)
    jax.block_until_ready(y)

    assert y.shape == (batch, num_channels[-1], seq_len), y.shape
    assert bool(jnp.all(jnp.isfinite(y)))

    y_ref = tcn_reference(x, params, dilations, kernel_size)
    assert bool(jnp.allclose(y, y_ref, rtol=5e-2, atol=5e-2)), \
        float(jnp.max(jnp.abs(y - y_ref)))
    print("KERNEL_OK")
</pallas_src>

<mosaic_0001>
module attributes {stable_mosaic.version = 11 : i64} {
  func.func @tcn_stack_kernel(%arg0: i32, %arg1: i32, %arg2: memref<1x8x128xf32, #tpu.memory_space<vmem>>, %arg3: memref<256x128xf32, #tpu.memory_space<vmem>>, %arg4: memref<1x128xf32, #tpu.memory_space<vmem>>, %arg5: memref<256x128xf32, #tpu.memory_space<vmem>>, %arg6: memref<1x128xf32, #tpu.memory_space<vmem>>, %arg7: memref<128x128xf32, #tpu.memory_space<vmem>>, %arg8: memref<1x128xf32, #tpu.memory_space<vmem>>, %arg9: memref<256x128xf32, #tpu.memory_space<vmem>>, %arg10: memref<1x128xf32, #tpu.memory_space<vmem>>, %arg11: memref<256x128xf32, #tpu.memory_space<vmem>>, %arg12: memref<1x128xf32, #tpu.memory_space<vmem>>, %arg13: memref<1x8x128xf32, #tpu.memory_space<vmem>>, %arg14: memref<8x128xf32, #tpu.memory_space<vmem>>, %arg15: memref<8x128xf32, #tpu.memory_space<vmem>>, %arg16: memref<8x128xf32, #tpu.memory_space<vmem>>, %arg17: memref<8x128xf32, #tpu.memory_space<vmem>>) attributes {dimension_semantics = [#tpu.dimension_semantics<parallel>, #tpu.dimension_semantics<arbitrary>], iteration_bounds = array<i64: 2, 2>, scalar_prefetch = 0 : i64, scratch_operands = 4 : i64, tpu.core_type = #tpu.core_type<tc>, window_params = [{transform_indices = @transform_0, window_bounds = array<i64: 1, 8, 128>}, {pipeline_mode = #tpu.pipeline_mode<synchronous>, transform_indices = @transform_1, window_bounds = array<i64: 256, 128>}, {pipeline_mode = #tpu.pipeline_mode<synchronous>, transform_indices = @transform_2, window_bounds = array<i64: 1, 128>}, {pipeline_mode = #tpu.pipeline_mode<synchronous>, transform_indices = @transform_3, window_bounds = array<i64: 256, 128>}, {pipeline_mode = #tpu.pipeline_mode<synchronous>, transform_indices = @transform_4, window_bounds = array<i64: 1, 128>}, {pipeline_mode = #tpu.pipeline_mode<synchronous>, transform_indices = @transform_5, window_bounds = array<i64: 128, 128>}, {pipeline_mode = #tpu.pipeline_mode<synchronous>, transform_indices = @transform_6, window_bounds = array<i64: 1, 128>}, {pipeline_mode = #tpu.pipeline_mode<synchronous>, transform_indices = @transform_7, window_bounds = array<i64: 256, 128>}, {pipeline_mode = #tpu.pipeline_mode<synchronous>, transform_indices = @transform_8, window_bounds = array<i64: 1, 128>}, {pipeline_mode = #tpu.pipeline_mode<synchronous>, transform_indices = @transform_9, window_bounds = array<i64: 256, 128>}, {pipeline_mode = #tpu.pipeline_mode<synchronous>, transform_indices = @transform_10, window_bounds = array<i64: 1, 128>}, {transform_indices = @transform_11, window_bounds = array<i64: 1, 8, 128>}]} {
    %c0_i32 = arith.constant 0 : i32
    %0 = arith.cmpi eq, %arg1, %c0_i32 : i32
    %1 = arith.extui %0 : i1 to i32
    %c0_i32_0 = arith.constant 0 : i32
    %2 = arith.cmpi ne, %1, %c0_i32_0 : i32
    scf.if %2 {
      %cst_52 = arith.constant 0.000000e+00 : f32
      %75 = vector.broadcast %cst_52 : f32 to vector<8x128xf32>
      %c0_53 = arith.constant 0 : index
      %c0_54 = arith.constant 0 : index
      %76 = vector.load %arg14[%c0_53, %c0_54] : memref<8x128xf32, #tpu.memory_space<vmem>>, vector<8x128xf32>
      tpu.vector_store %arg14[%c0_53, %c0_54], %75 {strides = array<i32>} : memref<8x128xf32, #tpu.memory_space<vmem>>, vector<8x128xf32>,
      %cst_55 = arith.constant 0.000000e+00 : f32
      %77 = vector.broadcast %cst_55 : f32 to vector<8x128xf32>
      %c0_56 = arith.constant 0 : index
      %c0_57 = arith.constant 0 : index
      %78 = vector.load %arg15[%c0_56, %c0_57] : memref<8x128xf32, #tpu.memory_space<vmem>>, vector<8x128xf32>
      tpu.vector_store %arg15[%c0_56, %c0_57], %77 {strides = array<i32>} : memref<8x128xf32, #tpu.memory_space<vmem>>, vector<8x128xf32>,
      %cst_58 = arith.constant 0.000000e+00 : f32
      %79 = vector.broadcast %cst_58 : f32 to vector<8x128xf32>
      %c0_59 = arith.constant 0 : index
      %c0_60 = arith.constant 0 : index
      %80 = vector.load %arg16[%c0_59, %c0_60] : memref<8x128xf32, #tpu.memory_space<vmem>>, vector<8x128xf32>
      tpu.vector_store %arg16[%c0_59, %c0_60], %79 {strides = array<i32>} : memref<8x128xf32, #tpu.memory_space<vmem>>, vector<8x128xf32>,
      %cst_61 = arith.constant 0.000000e+00 : f32
      %81 = vector.broadcast %cst_61 : f32 to vector<8x128xf32>
      %c0_62 = arith.constant 0 : index
      %c0_63 = arith.constant 0 : index
      %82 = vector.load %arg17[%c0_62, %c0_63] : memref<8x128xf32, #tpu.memory_space<vmem>>, vector<8x128xf32>
      tpu.vector_store %arg17[%c0_62, %c0_63], %81 {strides = array<i32>} : memref<8x128xf32, #tpu.memory_space<vmem>>, vector<8x128xf32>,
    } else {
    }
    %c0 = arith.constant 0 : index
    %c0_1 = arith.constant 0 : index
    %c0_2 = arith.constant 0 : index
    %3 = vector.load %arg2[%c0, %c0_1, %c0_2] : memref<1x8x128xf32, #tpu.memory_space<vmem>>, vector<1x8x128xf32>
    %4 = vector.shape_cast %3 : vector<1x8x128xf32> to vector<8x128xf32>
    %c0_3 = arith.constant 0 : index
    %c0_4 = arith.constant 0 : index
    %5 = vector.load %arg14[%c0_3, %c0_4] : memref<8x128xf32, #tpu.memory_space<vmem>>, vector<8x128xf32>
    %6 = tpu.concatenate %5, %4 in 0 : vector<8x128xf32>, vector<8x128xf32> -> vector<16x128xf32>
    %7 = vector.extract_strided_slice %6 {offsets = [8, 0], sizes = [8, 128], strides = [1, 1]} : vector<16x128xf32> to vector<8x128xf32>
    %c0_5 = arith.constant 0 : index
    %c0_6 = arith.constant 0 : index
    %8 = vector.load %arg14[%c0_5, %c0_6] : memref<8x128xf32, #tpu.memory_space<vmem>>, vector<8x128xf32>
    tpu.vector_store %arg14[%c0_5, %c0_6], %7 {strides = array<i32>} : memref<8x128xf32, #tpu.memory_space<vmem>>, vector<8x128xf32>,
    %9 = vector.extract_strided_slice %6 {offsets = [7, 0], sizes = [8, 128], strides = [1, 1]} : vector<16x128xf32> to vector<8x128xf32>
    %10 = vector.extract_strided_slice %6 {offsets = [8, 0], sizes = [8, 128], strides = [1, 1]} : vector<16x128xf32> to vector<8x128xf32>
    %11 = tpu.concatenate %9, %10 in 1 : vector<8x128xf32>, vector<8x128xf32> -> vector<8x256xf32>
    %c0_7 = arith.constant 0 : index
    %c0_8 = arith.constant 0 : index
    %12 = vector.load %arg3[%c0_7, %c0_8] : memref<256x128xf32, #tpu.memory_space<vmem>>, vector<256x128xf32>
    %cst = arith.constant dense<0.000000e+00> : vector<8x128xf32>
    %13 = tpu.matmul %11, %12, %cst {dimension_numbers = #tpu.dot_dimension_numbers<[1], [0], [0], [1], [0, 0, 1, 1], [], []>} : vector<8x256xf32>, vector<256x128xf32>, vector<8x128xf32> -> vector<8x128xf32>
    %c0_9 = arith.constant 0 : index
    %c0_10 = arith.constant 0 : index
    %14 = vector.load %arg4[%c0_9, %c0_10] : memref<1x128xf32, #tpu.memory_space<vmem>>, vector<1x128xf32>
    %15 = vector.broadcast %14 : vector<1x128xf32> to vector<8x128xf32>
    %16 = arith.addf %13, %15 : vector<8x128xf32>
    %cst_11 = arith.constant 0.000000e+00 : f32
    %17 = vector.broadcast %cst_11 : f32 to vector<8x128xf32>
    %18 = arith.maximumf %16, %17 : vector<8x128xf32>
    %c0_12 = arith.constant 0 : index
    %c0_13 = arith.constant 0 : index
    %19 = vector.load %arg15[%c0_12, %c0_13] : memref<8x128xf32, #tpu.memory_space<vmem>>, vector<8x128xf32>
    %20 = tpu.concatenate %19, %18 in 0 : vector<8x128xf32>, vector<8x128xf32> -> vector<16x128xf32>
    %21 = vector.extract_strided_slice %20 {offsets = [8, 0], sizes = [8, 128], strides = [1, 1]} : vector<16x128xf32> to vector<8x128xf32>
    %c0_14 = arith.constant 0 : index
    %c0_15 = arith.constant 0 : index
    %22 = vector.load %arg15[%c0_14, %c0_15] : memref<8x128xf32, #tpu.memory_space<vmem>>, vector<8x128xf32>
    tpu.vector_store %arg15[%c0_14, %c0_15], %21 {strides = array<i32>} : memref<8x128xf32, #tpu.memory_space<vmem>>, vector<8x128xf32>,
    %23 = vector.extract_strided_slice %20 {offsets = [7, 0], sizes = [8, 128], strides = [1, 1]} : vector<16x128xf32> to vector<8x128xf32>
    %24 = vector.extract_strided_slice %20 {offsets = [8, 0], sizes = [8, 128], strides = [1, 1]} : vector<16x128xf32> to vector<8x128xf32>
    %25 = tpu.concatenate %23, %24 in 1 : vector<8x128xf32>, vector<8x128xf32> -> vector<8x256xf32>
    %c0_16 = arith.constant 0 : index
    %c0_17 = arith.constant 0 : index
    %26 = vector.load %arg5[%c0_16, %c0_17] : memref<256x128xf32, #tpu.memory_space<vmem>>, vector<256x128xf32>
    %cst_18 = arith.constant dense<0.000000e+00> : vector<8x128xf32>
    %27 = tpu.matmul %25, %26, %cst_18 {dimension_numbers = #tpu.dot_dimension_numbers<[1], [0], [0], [1], [0, 0, 1, 1], [], []>} : vector<8x256xf32>, vector<256x128xf32>, vector<8x128xf32> -> vector<8x128xf32>
    %c0_19 = arith.constant 0 : index
    %c0_20 = arith.constant 0 : index
    %28 = vector.load %arg6[%c0_19, %c0_20] : memref<1x128xf32, #tpu.memory_space<vmem>>, vector<1x128xf32>
    %29 = vector.broadcast %28 : vector<1x128xf32> to vector<8x128xf32>
    %30 = arith.addf %27, %29 : vector<8x128xf32>
    %cst_21 = arith.constant 0.000000e+00 : f32
    %31 = vector.broadcast %cst_21 : f32 to vector<8x128xf32>
    %32 = arith.maximumf %30, %31 : vector<8x128xf32>
    %c0_22 = arith.constant 0 : index
    %c0_23 = arith.constant 0 : index
    %33 = vector.load %arg7[%c0_22, %c0_23] : memref<128x128xf32, #tpu.memory_space<vmem>>, vector<128x128xf32>
    %cst_24 = arith.constant dense<0.000000e+00> : vector<8x128xf32>
    %34 = tpu.matmul %4, %33, %cst_24 {dimension_numbers = #tpu.dot_dimension_numbers<[1], [0], [0], [1], [0, 0, 1, 1], [], []>} : vector<8x128xf32>, vector<128x128xf32>, vector<8x128xf32> -> vector<8x128xf32>
    %c0_25 = arith.constant 0 : index
    %c0_26 = arith.constant 0 : index
    %35 = vector.load %arg8[%c0_25, %c0_26] : memref<1x128xf32, #tpu.memory_space<vmem>>, vector<1x128xf32>
    %36 = vector.broadcast %35 : vector<1x128xf32> to vector<8x128xf32>
    %37 = arith.addf %34, %36 : vector<8x128xf32>
    %38 = arith.addf %32, %37 : vector<8x128xf32>
    %cst_27 = arith.constant 0.000000e+00 : f32
    %39 = vector.broadcast %cst_27 : f32 to vector<8x128xf32>
    %40 = arith.maximumf %38, %39 : vector<8x128xf32>
    %c0_28 = arith.constant 0 : index
    %c0_29 = arith.constant 0 : index
    %41 = vector.load %arg16[%c0_28, %c0_29] : memref<8x128xf32, #tpu.memory_space<vmem>>, vector<8x128xf32>
    %42 = tpu.concatenate %41, %40 in 0 : vector<8x128xf32>, vector<8x128xf32> -> vector<16x128xf32>
    %43 = vector.extract_strided_slice %42 {offsets = [8, 0], sizes = [8, 128], strides = [1, 1]} : vector<16x128xf32> to vector<8x128xf32>
    %c0_30 = arith.constant 0 : index
    %c0_31 = arith.constant 0 : index
    %44 = vector.load %arg16[%c0_30, %c0_31] : memref<8x128xf32, #tpu.memory_space<vmem>>, vector<8x128xf32>
    tpu.vector_store %arg16[%c0_30, %c0_31], %43 {strides = array<i32>} : memref<8x128xf32, #tpu.memory_space<vmem>>, vector<8x128xf32>,
    %45 = vector.extract_strided_slice %42 {offsets = [6, 0], sizes = [8, 128], strides = [1, 1]} : vector<16x128xf32> to vector<8x128xf32>
    %46 = vector.extract_strided_slice %42 {offsets = [8, 0], sizes = [8, 128], strides = [1, 1]} : vector<16x128xf32> to vector<8x128xf32>
    %47 = tpu.concatenate %45, %46 in 1 : vector<8x128xf32>, vector<8x128xf32> -> vector<8x256xf32>
    %c0_32 = arith.constant 0 : index
    %c0_33 = arith.constant 0 : index
    %48 = vector.load %arg9[%c0_32, %c0_33] : memref<256x128xf32, #tpu.memory_space<vmem>>, vector<256x128xf32>
    %cst_34 = arith.constant dense<0.000000e+00> : vector<8x128xf32>
    %49 = tpu.matmul %47, %48, %cst_34 {dimension_numbers = #tpu.dot_dimension_numbers<[1], [0], [0], [1], [0, 0, 1, 1], [], []>} : vector<8x256xf32>, vector<256x128xf32>, vector<8x128xf32> -> vector<8x128xf32>
    %c0_35 = arith.constant 0 : index
    %c0_36 = arith.constant 0 : index
    %50 = vector.load %arg10[%c0_35, %c0_36] : memref<1x128xf32, #tpu.memory_space<vmem>>, vector<1x128xf32>
    %51 = vector.broadcast %50 : vector<1x128xf32> to vector<8x128xf32>
    %52 = arith.addf %49, %51 : vector<8x128xf32>
    %cst_37 = arith.constant 0.000000e+00 : f32
    %53 = vector.broadcast %cst_37 : f32 to vector<8x128xf32>
    %54 = arith.maximumf %52, %53 : vector<8x128xf32>
    %c0_38 = arith.constant 0 : index
    %c0_39 = arith.constant 0 : index
    %55 = vector.load %arg17[%c0_38, %c0_39] : memref<8x128xf32, #tpu.memory_space<vmem>>, vector<8x128xf32>
    %56 = tpu.concatenate %55, %54 in 0 : vector<8x128xf32>, vector<8x128xf32> -> vector<16x128xf32>
    %57 = vector.extract_strided_slice %56 {offsets = [8, 0], sizes = [8, 128], strides = [1, 1]} : vector<16x128xf32> to vector<8x128xf32>
    %c0_40 = arith.constant 0 : index
    %c0_41 = arith.constant 0 : index
    %58 = vector.load %arg17[%c0_40, %c0_41] : memref<8x128xf32, #tpu.memory_space<vmem>>, vector<8x128xf32>
    tpu.vector_store %arg17[%c0_40, %c0_41], %57 {strides = array<i32>} : memref<8x128xf32, #tpu.memory_space<vmem>>, vector<8x128xf32>,
    %59 = vector.extract_strided_slice %56 {offsets = [6, 0], sizes = [8, 128], strides = [1, 1]} : vector<16x128xf32> to vector<8x128xf32>
    %60 = vector.extract_strided_slice %56 {offsets = [8, 0], sizes = [8, 128], strides = [1, 1]} : vector<16x128xf32> to vector<8x128xf32>
    %61 = tpu.concatenate %59, %60 in 1 : vector<8x128xf32>, vector<8x128xf32> -> vector<8x256xf32>
    %c0_42 = arith.constant 0 : index
    %c0_43 = arith.constant 0 : index
    %62 = vector.load %arg11[%c0_42, %c0_43] : memref<256x128xf32, #tpu.memory_space<vmem>>, vector<256x128xf32>
    %cst_44 = arith.constant dense<0.000000e+00> : vector<8x128xf32>
    %63 = tpu.matmul %61, %62, %cst_44 {dimension_numbers = #tpu.dot_dimension_numbers<[1], [0], [0], [1], [0, 0, 1, 1], [], []>} : vector<8x256xf32>, vector<256x128xf32>, vector<8x128xf32> -> vector<8x128xf32>
    %c0_45 = arith.constant 0 : index
    %c0_46 = arith.constant 0 : index
    %64 = vector.load %arg12[%c0_45, %c0_46] : memref<1x128xf32, #tpu.memory_space<vmem>>, vector<1x128xf32>
    %65 = vector.broadcast %64 : vector<1x128xf32> to vector<8x128xf32>
    %66 = arith.addf %63, %65 : vector<8x128xf32>
    %cst_47 = arith.constant 0.000000e+00 : f32
    %67 = vector.broadcast %cst_47 : f32 to vector<8x128xf32>
    %68 = arith.maximumf %66, %67 : vector<8x128xf32>
    %69 = arith.addf %68, %40 : vector<8x128xf32>
    %cst_48 = arith.constant 0.000000e+00 : f32
    %70 = vector.broadcast %cst_48 : f32 to vector<8x128xf32>
    %71 = arith.maximumf %69, %70 : vector<8x128xf32>
    %c0_49 = arith.constant 0 : index
    %c0_50 = arith.constant 0 : index
    %c0_51 = arith.constant 0 : index
    %72 = vector.load %arg13[%c0_49, %c0_50, %c0_51] : memref<1x8x128xf32, #tpu.memory_space<vmem>>, vector<1x8x128xf32>
    %73 = vector.shape_cast %72 : vector<1x8x128xf32> to vector<8x128xf32>
    %74 = vector.shape_cast %71 : vector<8x128xf32> to vector<1x8x128xf32>
    tpu.vector_store %arg13[%c0_49, %c0_50, %c0_51], %74 {strides = array<i32>} : memref<1x8x128xf32, #tpu.memory_space<vmem>>, vector<1x8x128xf32>,
    return
  }
  func.func @transform_0(%arg0: i32, %arg1: i32) -> (i32, i32, i32) {
    %c0_i32 = arith.constant 0 : i32
    %c0_i32_0 = arith.constant 0 : i32
    return %arg0, %arg1, %c0_i32 : i32, i32, i32
  }
  func.func @transform_1(%arg0: i32, %arg1: i32) -> (i32, i32) {
    %c0_i32 = arith.constant 0 : i32
    %c0_i32_0 = arith.constant 0 : i32
    %c0_i32_1 = arith.constant 0 : i32
    return %c0_i32, %c0_i32_0 : i32, i32
  }
  func.func @transform_2(%arg0: i32, %arg1: i32) -> (i32, i32) {
    %c0_i32 = arith.constant 0 : i32
    %c0_i32_0 = arith.constant 0 : i32
    %c0_i32_1 = arith.constant 0 : i32
    return %c0_i32, %c0_i32_0 : i32, i32
  }
  func.func @transform_3(%arg0: i32, %arg1: i32) -> (i32, i32) {
    %c0_i32 = arith.constant 0 : i32
    %c0_i32_0 = arith.constant 0 : i32
    %c0_i32_1 = arith.constant 0 : i32
    return %c0_i32, %c0_i32_0 : i32, i32
  }
  func.func @transform_4(%arg0: i32, %arg1: i32) -> (i32, i32) {
    %c0_i32 = arith.constant 0 : i32
    %c0_i32_0 = arith.constant 0 : i32
    %c0_i32_1 = arith.constant 0 : i32
    return %c0_i32, %c0_i32_0 : i32, i32
  }
  func.func @transform_5(%arg0: i32, %arg1: i32) -> (i32, i32) {
    %c0_i32 = arith.constant 0 : i32
    %c0_i32_0 = arith.constant 0 : i32
    %c0_i32_1 = arith.constant 0 : i32
    return %c0_i32, %c0_i32_0 : i32, i32
  }
  func.func @transform_6(%arg0: i32, %arg1: i32) -> (i32, i32) {
    %c0_i32 = arith.constant 0 : i32
    %c0_i32_0 = arith.constant 0 : i32
    %c0_i32_1 = arith.constant 0 : i32
    return %c0_i32, %c0_i32_0 : i32, i32
  }
  func.func @transform_7(%arg0: i32, %arg1: i32) -> (i32, i32) {
    %c0_i32 = arith.constant 0 : i32
    %c0_i32_0 = arith.constant 0 : i32
    %c0_i32_1 = arith.constant 0 : i32
    return %c0_i32, %c0_i32_0 : i32, i32
  }
  func.func @transform_8(%arg0: i32, %arg1: i32) -> (i32, i32) {
    %c0_i32 = arith.constant 0 : i32
    %c0_i32_0 = arith.constant 0 : i32
    %c0_i32_1 = arith.constant 0 : i32
    return %c0_i32, %c0_i32_0 : i32, i32
  }
  func.func @transform_9(%arg0: i32, %arg1: i32) -> (i32, i32) {
    %c0_i32 = arith.constant 0 : i32
    %c0_i32_0 = arith.constant 0 : i32
    %c0_i32_1 = arith.constant 0 : i32
    return %c0_i32, %c0_i32_0 : i32, i32
  }
  func.func @transform_10(%arg0: i32, %arg1: i32) -> (i32, i32) {
    %c0_i32 = arith.constant 0 : i32
    %c0_i32_0 = arith.constant 0 : i32
    %c0_i32_1 = arith.constant 0 : i32
    return %c0_i32, %c0_i32_0 : i32, i32
  }
  func.func @transform_11(%arg0: i32, %arg1: i32) -> (i32, i32, i32) {
    %c0_i32 = arith.constant 0 : i32
    %c0_i32_0 = arith.constant 0 : i32
    return %arg0, %arg1, %c0_i32 : i32, i32, i32
  }
}

</mosaic_0001>

<bundles_post_ra>
// kernel: tpu_custom_call.1
= control target key start
LH: loop header
LB: loop body
LE: loop exit
PB: predicated region body
PF: predicated region fallthrough
CT: control target
= control target key end

     0   :  { %s1834_s0 = inlined_call_operand.hbm [shape: f32[2,16,128], index: 0, kind: input, shape index: {}]   ;;  %s1835_s1 = inlined_call_operand.hbm [shape: f32[256,128], index: 1, kind: input, shape index: {}]   ;;  %s1836_s2 = inlined_call_operand.vmem [shape: f32[1,128], index: 2, kind: input, shape index: {}]   ;;  %s1837_s3 = inlined_call_operand.hbm [shape: f32[256,128], index: 3, kind: input, shape index: {}]   ;;  %s1838_s4 = inlined_call_operand.vmem [shape: f32[1,128], index: 4, kind: input, shape index: {}]   ;;  %s1839_s5 = inlined_call_operand.hbm [shape: f32[128,128], index: 5, kind: input, shape index: {}]   ;;  %s1840_s6 = inlined_call_operand.vmem [shape: f32[1,128], index: 6, kind: input, shape index: {}]   ;;  %s1841_s7 = inlined_call_operand.hbm [shape: f32[256,128], index: 7, kind: input, shape index: {}]   ;;  %s1842_s8 = inlined_call_operand.vmem [shape: f32[1,128], index: 8, kind: input, shape index: {}]   ;;  %s1843_s9 = inlined_call_operand.hbm [shape: f32[256,128], index: 9, kind: input, shape index: {}]   ;;  %s1844_s10 = inlined_call_operand.vmem [shape: f32[1,128], index: 10, kind: input, shape index: {}]   ;;  %s1845_s11 = inlined_call_operand.hbm [shape: f32[2,16,128], index: 11, kind: output, shape index: {}]  }
   0x1   :  { %1852 = sst [smem:[#allocation28_spill]] %s1835_s1 }
   0x2   :  { %1853 = sst [smem:[#allocation29_spill]] %s1837_s3 }
   0x3   :  { %1854 = sst [smem:[#allocation30_spill]] %s1839_s5 }
   0x4   :  { %1855 = sst [smem:[#allocation31_spill]] %s1841_s7 }
   0x5   :  { %1856 = sst [smem:[#allocation32_spill]] %s1842_s8 }
   0x6   :  { %1857 = sst [smem:[#allocation33_spill]] %s1843_s9 }
   0x7   :  { %1858 = sst [smem:[#allocation34_spill]] %s1844_s10 }
   0x8   :  { %1859 = sst [smem:[#allocation35_spill]] %s1845_s11 }
   0x9   :  { %16 = vsyncpa [#allocation7], 0 }
   0xa   :  { %18 = vsyncpa [#allocation7 + $0x1], 0 }
   0xb   :  { %19 = vsyncpa [#allocation10], 0 }
   0xc   :  { %20 = vsyncpa [#allocation13], 0 }
   0xd   :  { %21 = vsyncpa [#allocation16], 0 }
   0xe   :  { %22 = vsyncpa [#allocation8], 0 }
   0xf   :  { %24 = vsyncpa [#allocation8 + $0x1], 0  ;;  %s1595_s17 = smov 0   ;;  %s1597_s18 = smov 0  }
  0x10   :  { %s1599_s19 = smov 0   ;;  %s1601_s20 = smov 0  }
  0x11   :  { %s1603_s21 = smov 0   ;;  %s1605_s22 = smov 0  }
  0x12   :  { %s1607_s23 = smov 0   ;;  %s1609_s24 = smov 0  }
  0x13 LB: > { %1860 = sst [smem:[#allocation23_spill]] %s1497_s17  ;;  %s1846_s25 = sadd.s32 4294967295, %s1525_s24   ;;  %s1525_s24 = sphi %s1609_s24, %s30_s24   ;;  %s1521_s23 = sphi %s1607_s23, %s1893_s23   ;;  %s1517_s22 = sphi %s1605_s22, %s1892_s22   ;;  %s1513_s21 = sphi %s1603_s21, %s1891_s21   ;;  %s1509_s20 = sphi %s1601_s20, %s1890_s20   ;;  %s1505_s19 = sphi %s1599_s19, %s1889_s19   ;;  %s1501_s18 = sphi %s1597_s18, %s1888_s18   ;;  %s1497_s17 = sphi %s1595_s17, %s1887_s17  }
  0x14   : > { %1861 = sst [smem:[#allocation24_spill]] %s1513_s21  ;;  %p1070_p0 = scmp.ge.s32.totalorder %s1525_s24, 1 }
  0x15   : > { %p1639_p1 = scmp.eq.s32.totalorder %s1846_s25, 0  ;;  %p313_p2 = scmp.lt.s32.totalorder %s1525_s24, 5 }
  0x16   : > { %s1863_s1 = sld [smem:[#allocation28_spill]]  ;;  %s1527_s12 = smov [#allocation9]  }
  0x17   : > { %p1647_p3 = pnand %p1070_p0, %p313_p2  ;;  %s326_s13 = sshll.u32 %s1527_s12, 4  ;;  %s327_s13 = int_to_ptr.vmem [resolvable:$true] %s326_s13 }
  0x18   : > { %s1866_s5 = sld [smem:[#allocation30_spill]]  ;;  %s1528_s28 = smov 128  }
  0x19   : > { %p1122_p4 = pneg %p1647_p3  ;;  %s1529_s25 = smov 8  }
  0x1a   : > { %s1867_s3 = sld [smem:[#allocation29_spill]]  ;;  %s1531_s21 = smov [#allocation11]  }
  0x1b   : > { %p1655_p5 = pnand %p1122_p4, %p1639_p1  ;;  %s1868_s7 = sld [smem:[#allocation31_spill]] }
  0x1c   : > { %s324_s29 = sshll.u32 %s1863_s1, 4  ;;  %s1530_s1 = smov [#allocation12]   ;;  %s325_s29 = int_to_ptr.hbm [resolvable:$true] %s324_s29 }
  0x1d   : > { %1125 = dma.hbm_to_vmem [thread:$0]  (!%p1655_p5), %s325_s29, 4096, %s327_s13, [#allocation10], %s1528_s28, %s1528_s28, %s1529_s25  }
  0x1e   : > { %s358_s27 = sshll.u32 %s1866_s5, 4  ;;  %s360_s12 = sshll.u32 %s1530_s1, 4  ;;  %s359_s27 = int_to_ptr.hbm [resolvable:$true] %s358_s27  ;;  %s361_s12 = int_to_ptr.vmem [resolvable:$true] %s360_s12 }
  0x1f   : > { %1131 = dma.hbm_to_vmem [thread:$0]  (!%p1655_p5), %s359_s27, 2048, %s361_s12, [#allocation13], %s1528_s28, %s1528_s28, %s1529_s25  }
  0x20   : > { %s341_s8 = sshll.u32 %s1867_s3, 4  ;;  %s343_s29 = sshll.u32 %s1531_s21, 4  ;;  %s342_s8 = int_to_ptr.hbm [resolvable:$true] %s341_s8  ;;  %s344_s29 = int_to_ptr.vmem [resolvable:$true] %s343_s29 }
  0x21   : > { %s375_s5 = sshll.u32 %s1868_s7, 4  ;;  %s1532_s1 = smov [#allocation14]   ;;  %s376_s5 = int_to_ptr.hbm [resolvable:$true] %s375_s5 }
  0x22   : > { %1128 = dma.hbm_to_vmem [thread:$0]  (!%p1655_p5), %s342_s8, 4096, %s344_s29, [#allocation10], %s1528_s28, %s1528_s28, %s1529_s25  }
  0x23   : > { %s377_s10 = sshll.u32 %s1532_s1, 4  ;;  %s1869_s9 = sld [smem:[#allocation33_spill]]  ;;  %s378_s10 = int_to_ptr.vmem [resolvable:$true] %s377_s10 }
  0x24   : > { %1134 = dma.hbm_to_vmem [thread:$0]  (!%p1655_p5), %s376_s5, 4096, %s378_s10, [#allocation13], %s1528_s28, %s1528_s28, %s1529_s25  }
  0x25   : > { %s1533_s21 = smov [#allocation15]   ;;  %s1069_s8 = sadd.s32 4294967294, %s1525_s24  }
  0x26   : > { %s394_s12 = sshll.u32 %s1533_s21, 4  ;;  %s39_s15 = sadd.s32 1, %s1517_s22  ;;  %s395_s12 = int_to_ptr.vmem [resolvable:$true] %s394_s12 }
  0x27   : > { %s42_s16 = sadd.s32 1, %s1521_s23  ;;  %p40_p6 = scmp.ge.s32.totalorder %s39_s15, 2 }
  0x28   : > { %s51_s29 = sadd.s32 1, %s1505_s19  ;;  %p58_p7 = scmp.ne.s32.totalorder %s1505_s19, %s1501_s18 }
  0x29   : > { %s392_s27 = sshll.u32 %s1869_s9, 4  ;;  %p59_p8 = scmp.eq.s32.totalorder %s1525_s24, 0  ;;  %s393_s27 = int_to_ptr.hbm [resolvable:$true] %s392_s27 }
  0x2a   : > { %1137 = dma.hbm_to_vmem [thread:$0]  (!%p1655_p5), %s393_s27, 4096, %s395_s12, [#allocation16], %s1528_s28, %s1528_s28, %s1529_s25  }
  0x2b   : > { %s1895_s15 = smov (%p40_p6, %s39_s15), 0  ;;  %s1897_s16 = smov (!%p40_p6, %s42_s16), %s1521_s23 }
  0x2c   : > { %1870 = sst [smem:[#allocation25_spill]] %s1895_s15  ;;  %s47_s5 = ssub.s32 %s1517_s22, %s1895_s15 }
  0x2d   : > { %p1693_p9 = por %p59_p8, %p58_p7  ;;  %p44_p10 = scmp.ge.s32.totalorder %s1897_s16, 2 }
  0x2e   : > { %p64_p11 = scmp.ne.s32.totalorder %s1501_s18, %s1497_s17  ;;  %s1872_s25 = sadd.s32 4294967295, %s1525_s24  }
  0x2f   : > { %p300_p12 = scmp.eq.s32.totalorder %s1872_s25, 3  ;;  %p306_p13 = scmp.eq.s32.totalorder %s1069_s8, 3 }
  0x30   : > { %s1899_s16 = smov (%p44_p10, %s1897_s16), 0  ;;  %p1705_p0 = por %p1639_p1, %p64_p11 }
  0x31   : > { %1873 = sst [smem:[#allocation26_spill]] %s1899_s16  ;;  %p1709_p2 = por %p300_p12, %p58_p7 }
  0x32   : > { %s46_s10 = ssub.s32 %s1521_s23, %s1899_s16  ;;  %p1715_p4 = por %p306_p13, %p64_p11 }
  0x33   : > { %s48_s13 = sor.u32 %s47_s5, %s46_s10  ;;  %p1151_p5 = scmp.lt.s32.totalorder %s1525_s24, 4 }
  0x34   : > { %s1876_s11 = scalar_select %p1715_p4, 1, 0 }
  0x35   : > { %p49_p6 = scmp.eq.s32.totalorder %s48_s13, 0  ;;  %s411_s27 = sand.u32 1, %s1505_s19  }
  0x36   : > { %1877 = sst [smem:[#allocation27_spill]] %s1876_s11  ;;  %s1077_s21 = sshll.u32 %s411_s27, 3 }
  0x37   : > { %s1722_s12 = scalar_select %p49_p6, %s1505_s19, %s51_s29  }
  0x38   : > { %s1078_s8 = sshll.u32 %s1521_s23, 1  ;;  %s415_s3 = scalar_lea.vmem [#allocation6], %s1077_s21 }
  0x39   : > { %s419_s25 = sadd.s32 %s1517_s22, %s1078_s8  ;;  %s425_s7 = sshll.u32 %s415_s3, 4  ;;  %s426_s7 = int_to_ptr.vmem [resolvable:$true] %s425_s7 }
  0x3a   : > { %s1079_s9 = sshll.u32 %s419_s25, 3  ;;  %p1139_p7 = pnand %p1151_p5, %p1693_p9 }
  0x3b   : > { %s421_s16 = scalar_lea.hbm %s1834_s0, %s1079_s9  ;;  %s412_s5 = scalar_lea.sflag [#allocation7], %s411_s27 }
  0x3c   : > { %s423_s11 = sshll.u32 %s421_s16, 4  ;;  %434 = sbr.rel (%p1647_p3) target bundleno = 677 (0x2a5), region = 64  ;;  %s424_s11 = int_to_ptr.hbm [resolvable:$true] %s423_s11 }
  0x3d   : > { %1141 = dma.hbm_to_vmem [thread:$0]  (!%p1139_p7), %s424_s11, 128, %s426_s7, %s412_s5  }
  0x3e   : > { %s1734_s29 = sand.u32 (!%p1647_p3), 1, %s1501_s18  }
  0x3f   : > { %s1081_s3 = sshll.u32 (!%p1647_p3), %s1734_s29, 3  ;;  %s437_s10 = scalar_lea.sflag (!%p1647_p3), [#allocation7], %s1734_s29 }
  0x40   : > { %s1738_s13 = scalar_lea.vmem (!%p1647_p3), [#allocation6], %s1081_s3 }
  0x41   : > { %1476 = dma.done.wait (%p1705_p0), %s437_s10, 128  }
  0x42   : > { %1478 = vsyncadd (%p1705_p0), %s437_s10, 4294967168 }
  0x43   : > { %1480 = dma.done.wait (%p1639_p1), [#allocation10], 8192  }
  0x44   : > { %1482 = vsyncadd (%p1639_p1), [#allocation10], 4294959104 }
  0x45   : > { %1484 = dma.done.wait (%p1639_p1), [#allocation13], 6144  }
  0x46   : > { %1486 = vsyncadd (%p1639_p1), [#allocation13], 4294961152 }
  0x47   : > { %1488 = dma.done.wait (%p1639_p1), [#allocation16], 4096  }
  0x48   : > { %1490 = vsyncadd (%p1639_p1), [#allocation16], 4294963200  ;;  %s1756_s7 = scalar_lea.vmem [#allocation17], %s1081_s3  ;;  %p1088_p3 = scmp.ne.s32.totalorder %s1509_s20, 0 }
  0x4a   : > { %508 = sbr.rel (%p1088_p3) target bundleno = 84 (0x54), region = 92 }
  0x4f   : > { %v1534_v0 = vmov 0.0  }
  0x50   : > { %509 = vst [vmem:[#allocation2] sm:$0xff] %v1534_v0 }
  0x51   : > { %510 = vst [vmem:[#allocation3] sm:$0xff] %v1534_v0 }
  0x52   : > { %511 = vst [vmem:[#allocation4] sm:$0xff] %v1534_v0 }
  0x53   : > { %512 = vst [vmem:[#allocation5] sm:$0xff] %v1534_v0 }
  0x54 PF: > { %v533_v1 = vld [vmem:[#allocation9 + $0x78] sm:$0xff]  ;;  %v532_v2 = vld [vmem:[#allocation9 + $0x70] sm:$0xff]  ;;  %v531_v5 = vld [vmem:[#allocation9 + $0x68] sm:$0xff]  ;;  %vm555_vm0 = vcmask 1040384   ;;  %vm776_vm1 = vcmask 1041408   ;;  %s1878_s14 = sld [smem:[#allocation24_spill]] }
  0x55   : > { %v549_v3 = vld [vmem:[#allocation9 + $0xf8] sm:$0xff]  ;;  %563 = vmatpush.msra.mxu0 %v533_v1  ;;  %v548_v4 = vld [vmem:[#allocation9 + $0xf0] sm:$0xff]  ;;  %v547_v6 = vld [vmem:[#allocation9 + $0xe8] sm:$0xff]  ;;  %s1879_s27 = sld [smem:[#allocation32_spill]]  ;;  %s932_s15 = sshll.u32 %s1756_s7, 4  ;;  %s933_s15 = int_to_ptr.vmem [resolvable:$true] %s932_s15 }
  0x56   : > { %583 = vmatpush.msra.mxu1 %v549_v3  ;;  %v530_v7 = vld [vmem:[#allocation9 + $0x60] sm:$0xff]  ;;  %v529_v9 = vld [vmem:[#allocation9 + $0x58] sm:$0xff]  ;;  %v528_v11 = vld [vmem:[#allocation9 + $0x50] sm:$0xff]  ;;  %s1880_s5 = sld [smem:[#allocation34_spill]] }
  0x57   : > { %564 = vmatpush.msra.mxu0 %v532_v2  ;;  %v546_v8 = vld [vmem:[#allocation9 + $0xe0] sm:$0xff]  ;;  %v545_v10 = vld [vmem:[#allocation9 + $0xd8] sm:$0xff]  ;;  %v544_v12 = vld [vmem:[#allocation9 + $0xd0] sm:$0xff]  ;;  %s1881_s17 = sld [smem:[#allocation35_spill]] }
  0x58   : > { %584 = vmatpush.msra.mxu1 %v548_v4  ;;  %v527_v13 = vld [vmem:[#allocation9 + $0x48] sm:$0xff]  ;;  %v1760_v15 = vld [vmem:[%s1738_s13] sm:$0xff]  ;;  %v526_v19 = vld [vmem:[#allocation9 + $0x40] sm:$0xff] }
  0x59   : > { %565 = vmatpush.msra.mxu0 %v531_v5  ;;  %v543_v14 = vld [vmem:[#allocation9 + $0xc8] sm:$0xff]  ;;  %v1762_v16 = vld [vmem:[#allocation2] sm:$0xff]  ;;  %v639_v17 = vld [vmem:[#allocation11 + $0xf8] sm:$0xff]  ;;  %v557_v47 = vrot.slane %v1760_v15, 7 }
  0x5a   : > { %585 = vmatpush.msra.mxu1 %v547_v6  ;;  %515 = vst [vmem:[#allocation2] sm:$0xff] %v1760_v15  ;;  %v638_v18 = vld [vmem:[#allocation11 + $0xf0] sm:$0xff]  ;;  %v542_v20 = vld [vmem:[#allocation9 + $0xc0] sm:$0xff]  ;;  %672 = vmatpush.msra.mxu3 %v639_v17  ;;  %v623_v21 = vld [vmem:[#allocation11 + $0x78] sm:$0xff]  ;;  %v556_v46 = vrot.slane %v1762_v16, 7  ;;  %s1094_s21 = sshll.u32 %s1878_s14, 1 }
  0x5b   : > { %566 = vmatpush.msra.mxu0 %v530_v7  ;;  %v637_v22 = vld [vmem:[#allocation11 + $0xe8] sm:$0xff]  ;;  %v622_v23 = vld [vmem:[#allocation11 + $0x70] sm:$0xff]  ;;  %v525_v24 = vld [vmem:[#allocation9 + $0x38] sm:$0xff]  ;;  %652 = vmatpush.msra.mxu2 %v623_v21  ;;  %s928_s3 = sadd.s32 %s1509_s20, %s1094_s21  ;;  %s918_s14 = scalar_lea.sflag [#allocation8], %s1734_s29 }
  0x5c   : > { %586 = vmatpush.msra.mxu1 %v546_v8  ;;  %v541_v25 = vld [vmem:[#allocation9 + $0xb8] sm:$0xff]  ;;  %673 = vmatpush.msra.mxu3 %v638_v18  ;;  %v636_v26 = vld [vmem:[#allocation11 + $0xe0] sm:$0xff]  ;;  %v621_v27 = vld [vmem:[#allocation11 + $0x68] sm:$0xff]  ;;  %v558_v56 = vsel %vm555_vm0, %v556_v46, %v557_v47  ;;  %s1095_s10 = sshll.u32 %s928_s3, 3 }
  0x5d   : > { %567 = vmatpush.msra.mxu0 %v529_v9  ;;  %v524_v28 = vld [vmem:[#allocation9 + $0x30] sm:$0xff]  ;;  %653 = vmatpush.msra.mxu2 %v622_v23  ;;  %v635_v30 = vld [vmem:[#allocation11 + $0xd8] sm:$0xff]  ;;  %v620_v31 = vld [vmem:[#allocation11 + $0x60] sm:$0xff]  ;;  %s1882_s26 = smov %s1881_s17  ;;  %s930_s30 = scalar_lea.hbm %s1881_s17, %s1095_s10 }
  0x5e   : > { %587 = vmatpush.msra.mxu1 %v545_v10  ;;  %v540_v29 = vld [vmem:[#allocation9 + $0xb0] sm:$0xff]  ;;  %674 = vmatpush.msra.mxu3 %v637_v22  ;;  %v523_v32 = vld [vmem:[#allocation9 + $0x28] sm:$0xff]  ;;  %v522_v34 = vld [vmem:[#allocation9 + $0x20] sm:$0xff]  ;;  %s934_s16 = sshll.u32 %s930_s30, 4  ;;  %s1435_s21 = scalar_lea.hbm %s1882_s26, 32  ;;  %s935_s16 = int_to_ptr.hbm [resolvable:$true] %s934_s16 }
  0x5f   : > { %568 = vmatpush.msra.mxu0 %v528_v11  ;;  %v539_v33 = vld [vmem:[#allocation9 + $0xa8] sm:$0xff]  ;;  %654 = vmatpush.msra.mxu2 %v621_v27  ;;  %v634_v35 = vld [vmem:[#allocation11 + $0xd0] sm:$0xff]  ;;  %v619_v36 = vld [vmem:[#allocation11 + $0x58] sm:$0xff]  ;;  %s1429_s20 = sshra.s32 %s935_s16, 4  ;;  %s1430_s20 = int_to_ptr.hbm [resolvable:$true] %s1429_s20 }
  0x60   : > { %588 = vmatpush.msra.mxu1 %v544_v12  ;;  %675 = vmatpush.msra.mxu3 %v636_v26  ;;  %v521_v37 = vld [vmem:[#allocation9 + $0x18] sm:$0xff]  ;;  %v538_v38 = vld [vmem:[#allocation9 + $0xa0] sm:$0xff]  ;;  %v633_v40 = vld [vmem:[#allocation11 + $0xc8] sm:$0xff]  ;;  %s1431_s28 = scalar_lea.hbm %s1430_s20, 8  ;;  %p1436_p10 = scmp.lt.s32.totalorder %s1430_s20, %s1882_s26 }
  0x61   : > { %569 = vmatpush.msra.mxu0 %v527_v13  ;;  %v537_v39 = vld [vmem:[#allocation9 + $0x98] sm:$0xff]  ;;  %655 = vmatpush.msra.mxu2 %v620_v31  ;;  %v618_v41 = vld [vmem:[#allocation11 + $0x50] sm:$0xff]  ;;  %v632_v42 = vld [vmem:[#allocation11 + $0xc0] sm:$0xff]  ;;  %p1432_p1 = scmp.ne.s32.totalorder %s1430_s20, %s1431_s28  ;;  %p1437_p11 = scmp.lt.s32.totalorder %s1435_s21, %s1431_s28 }
  0x62   : > { %589 = vmatpush.msra.mxu1 %v543_v14  ;;  %676 = vmatpush.msra.mxu3 %v635_v30  ;;  %v617_v43 = vld [vmem:[#allocation11 + $0x48] sm:$0xff]  ;;  %v520_v44 = vld [vmem:[#allocation9 + $0x10] sm:$0xff]  ;;  %v631_v48 = vld [vmem:[#allocation11 + $0xb8] sm:$0xff] }
  0x63   : > { %570 = vmatpush.msra.mxu0 %v526_v19  ;;  %656 = vmatpush.msra.mxu2 %v619_v36  ;;  %v536_v45 = vld [vmem:[#allocation9 + $0x90] sm:$0xff]  ;;  %v616_v49 = vld [vmem:[#allocation11 + $0x40] sm:$0xff]  ;;  %v519_v50 = vld [vmem:[#allocation9 + $0x8] sm:$0xff]  ;;  %p1433_p8 = pnand %p1432_p1, %p1709_p2  ;;  %p1438_p12 = por %p1437_p11, %p1436_p10 }
  0x64   : > { %590 = vmatpush.msra.mxu1 %v542_v20  ;;  %677 = vmatpush.msra.mxu3 %v634_v35  ;;  %v535_v51 = vld [vmem:[#allocation9 + $0x88] sm:$0xff]  ;;  %v630_v52 = vld [vmem:[#allocation11 + $0xb0] sm:$0xff]  ;;  %v615_v53 = vld [vmem:[#allocation11 + $0x38] sm:$0xff] }
  0x65   : > { %571 = vmatpush.msra.mxu0 %v525_v24  ;;  %657 = vmatpush.msra.mxu2 %v618_v41  ;;  %v518_v54 = vld [vmem:[#allocation9] sm:$0xff]  ;;  %v708_v57 = vld [vmem:[#allocation12 + $0x78] sm:$0xff]  ;;  %v629_v58 = vld [vmem:[#allocation11 + $0xa8] sm:$0xff]  ;;  %p1434_p9 = pneg %p1433_p8 }
  0x66   : > { %591 = vmatpush.msra.mxu1 %v541_v25  ;;  %678 = vmatpush.msra.mxu3 %v633_v40  ;;  %v534_v55 = vld [vmem:[#allocation9 + $0x80] sm:$0xff]  ;;  %v614_v59 = vld [vmem:[#allocation11 + $0x30] sm:$0xff]  ;;  %v613_v62 = vld [vmem:[#allocation11 + $0x28] sm:$0xff] }
  0x67   : > { %572 = vmatpush.msra.mxu0 %v524_v28  ;;  %658 = vmatpush.msra.mxu2 %v617_v43  ;;  %v707_v60 = vld [vmem:[#allocation12 + $0x70] sm:$0xff]  ;;  %v628_v61 = vld [vmem:[#allocation11 + $0xa0] sm:$0xff]  ;;  %v706_v63 = vld [vmem:[#allocation12 + $0x68] sm:$0xff]  ;;  %p1439_p13 = pnand %p1438_p12, %p1434_p9 }
  0x68   : > { %592 = vmatpush.msra.mxu1 %v540_v29  ;;  %679 = vmatpush.msra.mxu3 %v632_v42  ;;  %v705_v0 = vld [vmem:[#allocation12 + $0x60] sm:$0xff]  ;;  %v704_v1 = vld [vmem:[#allocation12 + $0x58] sm:$0xff]  ;;  %v703_v2 = vld [vmem:[#allocation12 + $0x50] sm:$0xff] }
  0x69   : > { %573 = vmatpush.msra.mxu0 %v523_v32  ;;  %659 = vmatpush.msra.mxu2 %v616_v49  ;;  %v627_v3 = vld [vmem:[#allocation11 + $0x98] sm:$0xff]  ;;  %v612_v4 = vld [vmem:[#allocation11 + $0x20] sm:$0xff]  ;;  %v702_v5 = vld [vmem:[#allocation12 + $0x48] sm:$0xff] }
  0x6a   : > { %593 = vmatpush.msra.mxu1 %v539_v33  ;;  %680 = vmatpush.msra.mxu3 %v631_v48  ;;  %v626_v6 = vld [vmem:[#allocation11 + $0x90] sm:$0xff]  ;;  %v611_v7 = vld [vmem:[#allocation11 + $0x18] sm:$0xff]  ;;  %v701_v8 = vld [vmem:[#allocation12 + $0x40] sm:$0xff] }
  0x6b   : > { %574 = vmatpush.msra.mxu0 %v522_v34  ;;  %660 = vmatpush.msra.mxu2 %v615_v53  ;;  %v625_v9 = vld [vmem:[#allocation11 + $0x88] sm:$0xff]  ;;  %v610_v10 = vld [vmem:[#allocation11 + $0x10] sm:$0xff]  ;;  %v700_v11 = vld [vmem:[#allocation12 + $0x38] sm:$0xff] }
  0x6c   : > { %594 = vmatpush.msra.mxu1 %v538_v38  ;;  %681 = vmatpush.msra.mxu3 %v630_v52  ;;  %v624_v12 = vld [vmem:[#allocation11 + $0x80] sm:$0xff]  ;;  %v609_v13 = vld [vmem:[#allocation11 + $0x8] sm:$0xff]  ;;  %v699_v14 = vld [vmem:[#allocation12 + $0x30] sm:$0xff] }
  0x6d   : > { %575 = vmatpush.msra.mxu0 %v521_v37  ;;  %661 = vmatpush.msra.mxu2 %v614_v59  ;;  %v608_v16 = vld [vmem:[#allocation11] sm:$0xff]  ;;  %v698_v17 = vld [vmem:[#allocation12 + $0x28] sm:$0xff]  ;;  %v696_v19 = vld [vmem:[#allocation12 + $0x18] sm:$0xff] }
  0x6e   : > { %595 = vmatpush.msra.mxu1 %v537_v39  ;;  %682 = vmatpush.msra.mxu3 %v629_v58  ;;  %v697_v18 = vld [vmem:[#allocation12 + $0x20] sm:$0xff]  ;;  %v770_v20 = vld [vmem:[#allocation14 + $0xf8] sm:$0xff]  ;;  %v695_v21 = vld [vmem:[#allocation12 + $0x10] sm:$0xff] }
  0x6f   : > { %576 = vmatpush.msra.mxu0 %v520_v44  ;;  %662 = vmatpush.msra.mxu2 %v613_v62  ;;  %v769_v22 = vld [vmem:[#allocation14 + $0xf0] sm:$0xff]  ;;  %v754_v23 = vld [vmem:[#allocation14 + $0x78] sm:$0xff]  ;;  %v768_v24 = vld [vmem:[#allocation14 + $0xe8] sm:$0xff] }
  0x70   : > { %596 = vmatpush.msra.mxu1 %v536_v45  ;;  %683 = vmatpush.msra.mxu3 %v628_v61  ;;  %v753_v25 = vld [vmem:[#allocation14 + $0x70] sm:$0xff]  ;;  %v694_v26 = vld [vmem:[#allocation12 + $0x8] sm:$0xff]  ;;  %v767_v28 = vld [vmem:[#allocation14 + $0xe0] sm:$0xff] }
  0x71   : > { %577 = vmatpush.msra.mxu0 %v519_v50  ;;  %663 = vmatpush.msra.mxu2 %v612_v4  ;;  %v752_v27 = vld [vmem:[#allocation14 + $0x68] sm:$0xff]  ;;  %v693_v29 = vld [vmem:[#allocation12] sm:$0xff]  ;;  %v766_v31 = vld [vmem:[#allocation14 + $0xd8] sm:$0xff] }
  0x72   : > { %597 = vmatpush.msra.mxu1 %v535_v51  ;;  %684 = vmatpush.msra.mxu3 %v627_v3  ;;  %v751_v30 = vld [vmem:[#allocation14 + $0x60] sm:$0xff]  ;;  %v750_v32 = vld [vmem:[#allocation14 + $0x58] sm:$0xff]  ;;  %v765_v33 = vld [vmem:[#allocation14 + $0xd0] sm:$0xff] }
  0x73   : > { %578 = vmatpush.msra.mxu0 %v518_v54  ;;  %664 = vmatpush.msra.mxu2 %v611_v7  ;;  %v749_v34 = vld [vmem:[#allocation14 + $0x50] sm:$0xff]  ;;  %v764_v35 = vld [vmem:[#allocation14 + $0xc8] sm:$0xff]  ;;  %v763_v37 = vld [vmem:[#allocation14 + $0xc0] sm:$0xff] }
  0x74   : > { %598 = vmatpush.msra.mxu1 %v534_v55  ;;  %579 = vmatmul.f32.vlgmr.msra.gmra.mxu0 %v558_v56  ;;  %v748_v36 = vld [vmem:[#allocation14 + $0x48] sm:$0xff]  ;;  %v762_v38 = vld [vmem:[#allocation14 + $0xb8] sm:$0xff]  ;;  %v1230_v39 = vld [vmem:[%s1836_s2] ss:$0 sm:$0xff] }
  0x75   : > { %599 = vmatmul.f32.vlgmr.msra.gmra.mxu1 %v1760_v15  ;;  %713 = vmatpush.msrb.mxu0 %v708_v57  ;;  %v604_v42 = vld [vmem:[#allocation3] sm:$0xff]  ;;  %v747_v48 = vld [vmem:[#allocation14 + $0x40] sm:$0xff]  ;;  %v761_v49 = vld [vmem:[#allocation14 + $0xb0] sm:$0xff] }
  0x76   : > { %685 = vmatpush.msra.mxu3 %v626_v6  ;;  %665 = vmatpush.msra.mxu2 %v610_v10  ;;  %v645_v45 = vrot.slane %v604_v42, 7  ;;  %v746_v50 = vld [vmem:[#allocation14 + $0x38] sm:$0xff]  ;;  %v760_v51 = vld [vmem:[#allocation14 + $0xa8] sm:$0xff]  ;;  %v745_v52 = vld [vmem:[#allocation14 + $0x30] sm:$0xff] }
  0x77   : > { %714 = vmatpush.msrb.mxu0 %v707_v60  ;;  %784 = vmatpush.msrb.mxu1 %v754_v23  ;;  %v759_v53 = vld [vmem:[#allocation14 + $0xa0] sm:$0xff]  ;;  %v744_v54 = vld [vmem:[#allocation14 + $0x28] sm:$0xff]  ;;  %v758_v55 = vld [vmem:[#allocation14 + $0x98] sm:$0xff] }
  0x78   : > { %686 = vmatpush.msra.mxu3 %v625_v9  ;;  %666 = vmatpush.msra.mxu2 %v609_v13  ;;  %v743_v56 = vld [vmem:[#allocation14 + $0x20] sm:$0xff]  ;;  %v757_v57 = vld [vmem:[#allocation14 + $0x90] sm:$0xff]  ;;  %v742_v58 = vld [vmem:[#allocation14 + $0x18] sm:$0xff] }
  0x79   : > { %715 = vmatpush.msrb.mxu0 %v706_v63  ;;  %785 = vmatpush.msrb.mxu1 %v753_v25  ;;  %v756_v59 = vld [vmem:[#allocation14 + $0x88] sm:$0xff]  ;;  %v741_v60 = vld [vmem:[#allocation14 + $0x10] sm:$0xff]  ;;  %v755_v61 = vld [vmem:[#allocation14 + $0x80] sm:$0xff] }
  0x7a   : > { %687 = vmatpush.msra.mxu3 %v624_v12  ;;  %667 = vmatpush.msra.mxu2 %v608_v16  ;;  %v740_v62 = vld [vmem:[#allocation14 + $0x8] sm:$0xff]  ;;  %v739_v63 = vld [vmem:[#allocation14] sm:$0xff]  ;;  %v843_v3 = vld [vmem:[#allocation15 + $0x70] sm:$0xff] }
  0x7b   : > { %716 = vmatpush.msrb.mxu0 %v705_v0  ;;  %786 = vmatpush.msrb.mxu1 %v752_v27  ;;  %v860_v0 = vld [vmem:[#allocation15 + $0xf8] sm:$0xff]  ;;  %v858_v4 = vld [vmem:[#allocation15 + $0xe8] sm:$0xff]  ;;  %v857_v6 = vld [vmem:[#allocation15 + $0xe0] sm:$0xff] }
  0x7c   : > { %804 = vmatpush.msrb.mxu2 %v770_v20  ;;  %v841_v7 = vld [vmem:[#allocation15 + $0x60] sm:$0xff]  ;;  %v840_v9 = vld [vmem:[#allocation15 + $0x58] sm:$0xff]  ;;  %v855_v10 = vld [vmem:[#allocation15 + $0xd0] sm:$0xff] }
  0x7d   : > { %717 = vmatpush.msrb.mxu0 %v704_v1  ;;  %787 = vmatpush.msrb.mxu1 %v751_v30  ;;  %v859_v1 = vld [vmem:[#allocation15 + $0xf0] sm:$0xff]  ;;  %v854_v12 = vld [vmem:[#allocation15 + $0xc8] sm:$0xff]  ;;  %v837_v16 = vld [vmem:[#allocation15 + $0x40] sm:$0xff] }
  0x7e   : > { %805 = vmatpush.msrb.mxu2 %v769_v22  ;;  %v838_v13 = vld [vmem:[#allocation15 + $0x48] sm:$0xff]  ;;  %v851_v20 = vld [vmem:[#allocation15 + $0xb0] sm:$0xff] }
  0x7f   : > { %718 = vmatpush.msrb.mxu0 %v703_v2  ;;  %788 = vmatpush.msrb.mxu1 %v750_v32  ;;  %v844_v2 = vld [vmem:[#allocation15 + $0x78] sm:$0xff]  ;;  %v1232_v22 = vld [vmem:[%s1840_s6] ss:$0 sm:$0xff]  ;;  %v850_v25 = vld [vmem:[#allocation15 + $0xa8] sm:$0xff] }
  0x80   : > { %806 = vmatpush.msrb.mxu2 %v768_v24  ;;  %873 = vmatpush.msrb.mxu3 %v844_v2  ;;  %v735_v32 = vld [vmem:[#allocation4] sm:$0xff]  ;;  %v846_v42 = vld [vmem:[#allocation15 + $0x88] sm:$0xff] }
  0x81   : > { %719 = vmatpush.msrb.mxu0 %v702_v5  ;;  %789 = vmatpush.msrb.mxu1 %v749_v34  ;;  %v842_v5 = vld [vmem:[#allocation15 + $0x68] sm:$0xff] }
  0x82   : > { %807 = vmatpush.msrb.mxu2 %v767_v28  ;;  %874 = vmatpush.msrb.mxu3 %v843_v3  ;;  %v849_v28 = vld [vmem:[#allocation15 + $0xa0] sm:$0xff] }
  0x83   : > { %720 = vmatpush.msrb.mxu0 %v701_v8  ;;  %790 = vmatpush.msrb.mxu1 %v748_v36  ;;  %v856_v8 = vld [vmem:[#allocation15 + $0xd8] sm:$0xff] }
  0x84   : > { %808 = vmatpush.msrb.mxu2 %v766_v31  ;;  %875 = vmatpush.msrb.mxu3 %v842_v5 }
  0x85   : > { %721 = vmatpush.msrb.mxu0 %v700_v11  ;;  %791 = vmatpush.msrb.mxu1 %v747_v48  ;;  %v839_v11 = vld [vmem:[#allocation15 + $0x50] sm:$0xff] }
  0x86   : > { %809 = vmatpush.msrb.mxu2 %v765_v33  ;;  %876 = vmatpush.msrb.mxu3 %v841_v7 }
  0x87   : > { %722 = vmatpush.msrb.mxu0 %v699_v14  ;;  %792 = vmatpush.msrb.mxu1 %v746_v50  ;;  %v853_v14 = vld [vmem:[#allocation15 + $0xc0] sm:$0xff] }
  0x88   : > { %810 = vmatpush.msrb.mxu2 %v764_v35  ;;  %877 = vmatpush.msrb.mxu3 %v840_v9  ;;  %v777_v35 = vrot.slane %v735_v32, 6 }
  0x89   : > { %723 = vmatpush.msrb.mxu0 %v698_v17  ;;  %793 = vmatpush.msrb.mxu1 %v745_v52  ;;  %v852_v17 = vld [vmem:[#allocation15 + $0xb8] sm:$0xff] }
  0x8a   : > { %811 = vmatpush.msrb.mxu2 %v763_v37  ;;  %878 = vmatpush.msrb.mxu3 %v839_v11 }
  0x8b   : > { %724 = vmatpush.msrb.mxu0 %v697_v18  ;;  %794 = vmatpush.msrb.mxu1 %v744_v54  ;;  %v836_v18 = vld [vmem:[#allocation15 + $0x38] sm:$0xff] }
  0x8c   : > { %812 = vmatpush.msrb.mxu2 %v762_v38  ;;  %879 = vmatpush.msrb.mxu3 %v838_v13  ;;  %v834_v38 = vld [vmem:[#allocation15 + $0x28] sm:$0xff] }
  0x8d   : > { %725 = vmatpush.msrb.mxu0 %v696_v19  ;;  %795 = vmatpush.msrb.mxu1 %v743_v56  ;;  %v1231_v19 = vld [vmem:[%s1838_s4] ss:$0 sm:$0xff] }
  0x8e   : > { %813 = vmatpush.msrb.mxu2 %v761_v49  ;;  %880 = vmatpush.msrb.mxu3 %v837_v16 }
  0x8f   : > { %726 = vmatpush.msrb.mxu0 %v695_v21  ;;  %796 = vmatpush.msrb.mxu1 %v742_v58  ;;  %v835_v21 = vld [vmem:[#allocation15 + $0x30] sm:$0xff] }
  0x90   : > { %814 = vmatpush.msrb.mxu2 %v760_v51  ;;  %881 = vmatpush.msrb.mxu3 %v836_v18  ;;  %v825_v51 = vld [vmem:[#allocation5] sm:$0xff] }
  0x91   : > { %727 = vmatpush.msrb.mxu0 %v694_v26  ;;  %797 = vmatpush.msrb.mxu1 %v741_v60  ;;  %v866_v54 = vrot.slane %v825_v51, 6 }
  0x92   : > { %815 = vmatpush.msrb.mxu2 %v759_v53  ;;  %882 = vmatpush.msrb.mxu3 %v835_v21 }
  0x93   : > { %728 = vmatpush.msrb.mxu0 %v693_v29  ;;  %798 = vmatpush.msrb.mxu1 %v740_v62 }
  0x94   : > { %729 = vmatmul.f32.vlgmr.msrb.gmra.mxu0 %v1760_v15  ;;  %816 = vmatpush.msrb.mxu2 %v758_v55 }
  0x95   : > { %799 = vmatpush.msrb.mxu1 %v739_v63  ;;  %893 = vmatpush.msra.mxu0 %v860_v0 }
  0x96   : > { %817 = vmatpush.msrb.mxu2 %v757_v57  ;;  %883 = vmatpush.msrb.mxu3 %v834_v38  ;;  %v1234_v57 = vld [vmem:[%s1880_s5] ss:$0 sm:$0xff] }
  0x97   : > { %894 = vmatpush.msra.mxu0 %v859_v1 }
  0x98   : > { %818 = vmatpush.msrb.mxu2 %v756_v59 }
  0x99   : > { %895 = vmatpush.msra.mxu0 %v858_v4 }
  0x9a   : > { %819 = vmatpush.msrb.mxu2 %v755_v61 }
  0x9b   : > { %896 = vmatpush.msra.mxu0 %v857_v6 }
  0x9d   : > { %897 = vmatpush.msra.mxu0 %v856_v8 }
  0x9f   : > { %898 = vmatpush.msra.mxu0 %v855_v10 }
  0xa1   : > { %899 = vmatpush.msra.mxu0 %v854_v12 }
  0xa3   : > { %900 = vmatpush.msra.mxu0 %v853_v14 }
  0xa5   : > { %901 = vmatpush.msra.mxu0 %v852_v17 }
  0xa7   : > { %902 = vmatpush.msra.mxu0 %v851_v20 }
  0xa9   : > { %903 = vmatpush.msra.mxu0 %v850_v25 }
  0xab   : > { %904 = vmatpush.msra.mxu0 %v849_v28 }
  0xf1   : > { %v580_v40 = vpop.f32.mrf.mxu0 }
  0xf2   : > { %v600_v41 = vpop.f32.mrf.mxu1  ;;  %v581_v15 = vadd.f32 %v1230_v39, %v580_v40  ;;  %v848_v39 = vld [vmem:[#allocation15 + $0x98] sm:$0xff]  ;;  %v833_v40 = vld [vmem:[#allocation15 + $0x20] sm:$0xff] }
  0xf3   : > { %905 = vmatpush.msra.mxu0 %v848_v39  ;;  %884 = vmatpush.msrb.mxu3 %v833_v40 }
  0xf4   : > { %v601_v43 = vadd.f32 %v600_v41, %v581_v15  ;;  %v847_v41 = vld [vmem:[#allocation15 + $0x90] sm:$0xff]  ;;  %v832_v15 = vld [vmem:[#allocation15 + $0x18] sm:$0xff] }
  0xf5   : > { %906 = vmatpush.msra.mxu0 %v847_v41  ;;  %885 = vmatpush.msrb.mxu3 %v832_v15 }
  0xf6   : > { %v603_v44 = vmax.f32 %v601_v43, 0.0  ;;  %v831_v43 = vld [vmem:[#allocation15 + $0x10] sm:$0xff] }
  0xf7   : > { %907 = vmatpush.msra.mxu0 %v846_v42  ;;  %886 = vmatpush.msrb.mxu3 %v831_v43 }
  0xf8   : > { %605 = vst [vmem:[#allocation3] sm:$0xff] %v603_v44  ;;  %688 = vmatmul.f32.vlgmr.msra.gmra.mxu3 %v603_v44  ;;  %v646_v46 = vrot.slane %v603_v44, 7  ;;  %v845_v44 = vld [vmem:[#allocation15 + $0x80] sm:$0xff] }
  0xf9   : > { %908 = vmatpush.msra.mxu0 %v845_v44 }
  0xfa   : > { %v647_v47 = vsel %vm555_vm0, %v645_v45, %v646_v46  ;;  %v830_v45 = vld [vmem:[#allocation15 + $0x8] sm:$0xff]  ;;  %v829_v46 = vld [vmem:[#allocation15] sm:$0xff] }
  0xfb   : > { %668 = vmatmul.f32.vlgmr.msra.gmra.mxu2 %v647_v47  ;;  %887 = vmatpush.msrb.mxu3 %v830_v45  ;;  %v1233_v47 = vld [vmem:[%s1879_s27] ss:$0 sm:$0xff] }
  0xfd   : > { %888 = vmatpush.msrb.mxu3 %v829_v46 }
 0x111   : > { %v730_v24 = vpop.f32.mrf.mxu0 }
 0x112   : > { %v731_v30 = vadd.f32 %v1232_v22, %v730_v24 }
 0x17b   : > { %v689_v27 = vpop.f32.mrf.mxu3 }
 0x17e   : > { %v669_v23 = vpop.f32.mrf.mxu2 }
 0x17f   : > { %v670_v26 = vadd.f32 %v1231_v19, %v669_v23 }
 0x181   : > { %v690_v29 = vadd.f32 %v689_v27, %v670_v26 }
 0x183   : > { %v692_v31 = vmax.f32 %v690_v29, 0.0 }
 0x185   : > { %v733_v33 = vadd.f32 %v731_v30, %v692_v31 }
 0x187   : > { %v734_v34 = vmax.f32 %v733_v33, 0.0 }
 0x189   : > { %820 = vmatmul.f32.vlgmr.msrb.gmra.mxu2 %v734_v34  ;;  %736 = vst [vmem:[#allocation4] sm:$0xff] %v734_v34  ;;  %v778_v36 = vrot.slane %v734_v34, 6 }
 0x18b   : > { %v779_v37 = vsel %vm776_vm1, %v777_v35, %v778_v36 }
 0x18c   : > { %800 = vmatmul.f32.vlgmr.msrb.gmra.mxu1 %v779_v37 }
 0x209   : > { %v801_v48 = vpop.f32.mrf.mxu1 }
 0x20a   : > { %v802_v49 = vadd.f32 %v1233_v47, %v801_v48 }
 0x20c   : > { %v821_v50 = vpop.f32.mrf.mxu2 }
 0x20d   : > { %v822_v52 = vadd.f32 %v821_v50, %v802_v49 }
 0x20f   : > { %v824_v53 = vmax.f32 %v822_v52, 0.0 }
 0x211   : > { %826 = vst [vmem:[#allocation5] sm:$0xff] %v824_v53  ;;  %v867_v55 = vrot.slane %v824_v53, 6  ;;  %909 = vmatmul.f32.vlgmr.msra.gmra.mxu0 %v824_v53 }
 0x213   : > { %v868_v56 = vsel %vm776_vm1, %v866_v54, %v867_v55 }
 0x214   : > { %889 = vmatmul.f32.vlgmr.msrb.gmra.mxu3 %v868_v56 }
 0x28e   : > { %v910_v60 = vpop.f32.mrf.mxu0 }
 0x297   : > { %v890_v58 = vpop.f32.mrf.mxu3 }
 0x298   : > { %v891_v59 = vadd.f32 %v1234_v57, %v890_v58 }
 0x29a   : > { %v911_v61 = vadd.f32 %v910_v60, %v891_v59 }
 0x29c   : > { %v913_v62 = vmax.f32 %v911_v61, 0.0 }
 0x29e   : > { %v914_v63 = vadd.f32 %v913_v62, %v734_v34 }
 0x2a0   : > { %v915_v0 = vmax.f32 %v914_v63, 0.0 }
 0x2a2   : > { %916 = vst [vmem:[%s1756_s7] sm:$0xff] %v915_v0 }
 0x2a3   : > { %1442 = shalt.err (!%p1439_p13)
}
 0x2a4   : > { %1120 = dma.vmem_to_hbm [thread:$0]  (%p1709_p2), %s933_s15, 128, %s935_s16, %s918_s14  }
 0x2a5 PF: > { %s1883_s29 = sld [smem:[#allocation23_spill]]  ;;  %p1157_p0 = scmp.ge.s32.totalorder %s1525_s24, 2 }
 0x2a7   : > { %p1143_p5 = pnand %p1157_p0, %p1715_p4 }
 0x2a9   : > { %p1144_p6 = pneg %p1143_p5 }
 0x2ab   : > { %s946_s5 = sand.u32 1, %s1883_s29  }
 0x2ac   : > { %s947_s3 = scalar_lea.sflag [#allocation8], %s946_s5 }
 0x2ad   : > { %1492 = dma.done.wait (%p1144_p6), %s947_s3, 128  }
 0x2ae   : > { %1494 = vsyncadd (%p1144_p6), %s947_s3, 4294967168  ;;  %s30_s24 = sadd.s32 1, %s1525_s24   ;;  %s1885_s1 = sld [smem:[#allocation25_spill]] }
 0x2af   : > { %p27_p7 = scmp.ge.s32.totalorder %s30_s24, 6   ;;  %s1886_s10 = sld [smem:[#allocation26_spill]] }
 0x2b0   : > { %s1887_s17 = smov %s1501_s18  ;;  %s1888_s18 = smov %s1505_s19 }
 0x2b1   : > { %s1889_s19 = smov %s1722_s12  ;;  %s1890_s20 = smov %s1517_s22 }
 0x2b2   : > { %s1891_s21 = smov %s1521_s23  ;;  %29 = sbr.rel (!%p27_p7) target bundleno = 19 (0x13), region = 133 }
 0x2b4   : > { %s1892_s22 = smov %s1885_s1 }
 0x2b5   : > { %s1893_s23 = smov %s1886_s10 }
 0x2b7   :  { %953 = vsyncpa [#allocation7], 1 }
 0x2b8   :  { %955 = vsyncpa [#allocation7 + $0x1], 1 }
 0x2b9   :  { %956 = vsyncpa [#allocation10], 1 }
 0x2ba   :  { %957 = vsyncpa [#allocation13], 1 }
 0x2bb   :  { %958 = vsyncpa [#allocation16], 1 }
 0x2bc   :  { %959 = vsyncpa [#allocation8], 1 }
 0x2bd   :  { %961 = vsyncpa [#allocation8 + $0x1], 1 }

</bundles_post_ra>
